<compile_context>
chip_gen: v5e
topology: v5e:2x2
jax: 0.10.0
libtpu: 0.0.40
codegen_flags: <defaults>
</compile_context>

<pallas_src>
import jax
import jax.numpy as jnp
from jax.experimental import pallas as pl
from jax.experimental.pallas import tpu as pltpu

LANE = 128      # vreg lane width  -> pad feature dims to multiples of this
SUBLANE = 8     # vreg sublane     -> pad / tile batch in multiples of this


def _round_up(n, m):
    return ((n + m - 1) // m) * m


def _cdiv(a, b):
    return (a + b - 1) // b


# --------------------------------------------------------------------------
# Kernel
# --------------------------------------------------------------------------
def make_qnet_kernel(n_layers):
    """Kernel body chaining n_layers linear layers for one batch tile.

    Ref order: x_ref, (w0, b0, w1, b1, ...), out_ref.
    Matmuls run on the MXU with f32 accumulation; bias adds on the VPU in f32.
    With the default collapsed parameters n_layers == 1.
    """
    def kernel(*refs):
        x_ref = refs[0]
        o_ref = refs[-1]
        h = x_ref[...]
        for i in range(n_layers):
            w_ref = refs[1 + 2 * i]
            b_ref = refs[2 + 2 * i]
            h = jnp.dot(h.astype(w_ref.dtype), w_ref[...],
                        preferred_element_type=jnp.float32) + b_ref[...]
        o_ref[...] = h.astype(o_ref.dtype)
    return kernel


# --------------------------------------------------------------------------
# One-time parameter preparation (done at init, NOT per forward call)
# --------------------------------------------------------------------------
def prepare_qnet_params(params, weights_dtype=jnp.bfloat16, collapse=True):
    """Prepare PyTorch-layout parameters for the kernel.

    params: list of (W [out,in], b [out]) per layer (PyTorch nn.Linear layout).

    If collapse=True (default) the whole activation-free stack is folded into
    a single affine layer in f32 (algebraically identical).  Weights are
    transposed to [in,out], zero-padded to multiples of 128 on both feature
    dims, and cast to `weights_dtype`; biases stay f32 as [1, out_pad].
    Zero padding is semantics-preserving.
    """
    params_f32 = [(jnp.asarray(w, jnp.float32), jnp.asarray(b, jnp.float32))
                  for (w, b) in params]
    in_features = params_f32[0][0].shape[1]
    out_features = params_f32[-1][0].shape[0]

    if collapse:
        w0, b0 = params_f32[0]
        w_eff = w0.T                     # [in, h0]
        b_eff = b0                       # [h0]
        for (w, b) in params_f32[1:]:
            w_eff = w_eff @ w.T          # [in, out_i]
            b_eff = b_eff @ w.T + b
        layers_io = [(w_eff, b_eff)]
    else:
        layers_io = [(w.T, b) for (w, b) in params_f32]

    prepped_layers = []
    for (wt, b) in layers_io:
        fin, fout = wt.shape
        in_p = _round_up(fin, LANE)
        out_p = _round_up(fout, LANE)
        w_pad = jnp.zeros((in_p, out_p), jnp.float32).at[:fin, :fout].set(wt)
        b_pad = jnp.zeros((1, out_p), jnp.float32).at[0, :fout].set(b)
        # TODO(synk): v7x fp8 weight path (per-layer scale folded into the f32
        # bias/accumulation) for ~2x MXU rate; gated behind an accuracy check.
        prepped_layers.append((w_pad.astype(weights_dtype), b_pad))

    return {"layers": prepped_layers,
            "in_features": in_features,
            "out_features": out_features}


# --------------------------------------------------------------------------
# Forward wrapper
# --------------------------------------------------------------------------
def qnet_forward(x, prepped, block_batch=512, out_dtype=jnp.float32):
    """Forward pass of QNet (sequential Linear layers, no nonlinearities).

    x:       [batch, in_features] float32
    prepped: output of prepare_qnet_params
    """
    layers = prepped["layers"]
    n_layers = len(layers)
    in_f = prepped["in_features"]
    out_f = prepped["out_features"]
    batch = x.shape[0]
    assert x.shape[1] == in_f, "input feature mismatch"

    in_p = layers[0][0].shape[0]
    out_p = layers[-1][0].shape[1]

    # ---- batch tiling -----------------------------------------------------
    batch_8 = _round_up(batch, SUBLANE)
    tb = min(block_batch, batch_8)
    n_tiles = _cdiv(batch_8, tb)
    # Give both v7x TensorCores work whenever the batch allows >= 2 tiles.
    if n_tiles == 1 and batch_8 >= 2 * SUBLANE:
        n_tiles = 2
    # Spread rows evenly across tiles so the last tile isn't mostly padding.
    tb = _round_up(_cdiv(batch_8, n_tiles), SUBLANE)
    n_tiles = _cdiv(batch_8, tb)
    batch_p = n_tiles * tb

    # ---- input: skip the HBM zero-pad pass when already aligned -----------
    x = jnp.asarray(x, jnp.float32)
    if batch_p == batch and in_p == in_f:
        x_in = x
    else:
        x_in = jnp.zeros((batch_p, in_p), jnp.float32).at[:batch, :in_f].set(x)

    out_shape = jax.ShapeDtypeStruct((batch_p, out_p), out_dtype)
    out_spec = pl.BlockSpec((tb, out_p), lambda i: (i, 0))

    flops = sum(2 * batch_p * w.shape[0] * w.shape[1] for (w, _) in layers)
    param_bytes = sum(w.size * w.dtype.itemsize + b.size * b.dtype.itemsize
                      for (w, b) in layers)
    bytes_accessed = (x_in.size * x_in.dtype.itemsize
                      + batch_p * out_p * jnp.dtype(out_dtype).itemsize
                      + param_bytes)
    max_feat = max([in_p] + [w.shape[1] for (w, _) in layers])

    # TODO(synk): for very deep / wide un-collapsed stacks whose weights exceed
    # VMEM (esp. v7x 64 MiB), stream a stacked [L,in_p,out_p] weight tensor via
    # a second "arbitrary" grid axis / pltpu.emit_pipeline with pl.Buffered(2).

    def build_call(weight_pipeline_mode):
        weight_bufs = (weight_pipeline_mode.buffer_count
                       if weight_pipeline_mode is not None else 2)
        in_specs = [pl.BlockSpec((tb, in_p), lambda i: (i, 0))]
        flat_args = [x_in]
        for (w_pad, b_pad) in layers:
            flat_args += [w_pad, b_pad]
            kw = ({"pipeline_mode": weight_pipeline_mode}
                  if weight_pipeline_mode is not None else {})
            # Constant index_map -> weights/biases stay VMEM-resident.
            in_specs.append(pl.BlockSpec(w_pad.shape, lambda i: (0, 0), **kw))
            in_specs.append(pl.BlockSpec(b_pad.shape, lambda i: (0, 0), **kw))

        est_bytes = (param_bytes * weight_bufs
                     + 2 * tb * in_p * 4          # double-buffered x tile
                     + 2 * tb * out_p * 4         # double-buffered out tile
                     + 2 * tb * max_feat * 4)     # carried f32 intermediate
        vmem_limit = int(min(64 * 2**20,
                             max(32 * 2**20, 2 * est_bytes + (2 << 20))))

        call = pl.pallas_call(
            make_qnet_kernel(n_layers),
            grid=(n_tiles,),
            in_specs=in_specs,
            out_specs=out_spec,
            out_shape=out_shape,
            compiler_params=pltpu.CompilerParams(
                dimension_semantics=("parallel",),
                vmem_limit_bytes=vmem_limit),
            cost_estimate=pl.CostEstimate(
                flops=flops, transcendentals=0,
                bytes_accessed=bytes_accessed),
        )
        return call, flat_args

    # Single-buffer the resident parameters; fall back to default buffering if
    # this Pallas build rejects pipeline_mode.
    pipeline_mode = pl.Buffered(1) if hasattr(pl, "Buffered") else None
    try:
        call, flat_args = build_call(pipeline_mode)
        out_pad = call(*flat_args)
    except Exception:
        if pipeline_mode is None:
            raise
        call, flat_args = build_call(None)
        out_pad = call(*flat_args)

    if batch_p != batch or out_p != out_f:
        out_pad = out_pad[:batch, :out_f]
    return out_pad


# --------------------------------------------------------------------------
# Init + reference (for validation)
# --------------------------------------------------------------------------
def init_linear_params(key, structure):
    """Deterministic init mimicking nn.Linear default (uniform +/- 1/sqrt(fan_in))."""
    params = []
    for (fan_in, fan_out) in structure:
        key, kw, kb = jax.random.split(key, 3)
        bound = 1.0 / jnp.sqrt(jnp.float32(fan_in))
        w = jax.random.uniform(kw, (fan_out, fan_in), jnp.float32, -bound, bound)
        b = jax.random.uniform(kb, (fan_out,), jnp.float32, -bound, bound)
        params.append((w, b))
    return params


def qnet_reference(x, params):
    """Pure-JAX reference (same math as torch nn.Sequential of Linear)."""
    h = x
    for (w, b) in params:
        h = h @ w.T + b
    return h


if __name__ == "__main__":
    key = jax.random.PRNGKey(0)

    # Example structure: [(in, hidden), (hidden, hidden), (hidden, out)]
    structure = [(16, 32), (32, 32), (32, 4)]
    batch = 8

    kx, kp = jax.random.split(key)
    x = jax.random.normal(kx, (batch, structure[0][0]), jnp.float32)
    params = init_linear_params(kp, structure)
    ref = qnet_reference(x, params)

    # 1) Collapsed single-affine, f32 weights (algebraically identical).
    pre_f32 = prepare_qnet_params(params, weights_dtype=jnp.float32, collapse=True)
    out_f32 = jax.block_until_ready(qnet_forward(x, pre_f32))
    assert out_f32.shape == (batch, structure[-1][1])
    assert jnp.allclose(out_f32, ref, atol=2e-4, rtol=2e-4), "collapsed f32 mismatch"

    # 2) Layer-by-layer path (generic kernel), f32 weights.
    pre_stack = prepare_qnet_params(params, weights_dtype=jnp.float32, collapse=False)
    out_stack = jax.block_until_ready(qnet_forward(x, pre_stack))
    assert jnp.allclose(out_stack, ref, atol=1e-4, rtol=1e-4), "stacked f32 mismatch"

    # 3) Collapsed, bf16 weights (MXU-native rate; f32 accumulation).
    pre_bf16 = prepare_qnet_params(params)  # default: collapse=True, bf16
    out_bf16 = jax.block_until_ready(qnet_forward(x, pre_bf16))
    assert out_bf16.shape == (batch, structure[-1][1])
    assert jnp.allclose(out_bf16, ref, atol=5e-2, rtol=5e-2), "bf16 mismatch"

    print("KERNEL_OK")
</pallas_src>

<mosaic_0001>
module attributes {stable_mosaic.version = 11 : i64} {
  func.func @kernel(%arg0: i32, %arg1: memref<8x128xf32, #tpu.memory_space<vmem>>, %arg2: memref<128x128xf32, #tpu.memory_space<vmem>>, %arg3: memref<1x128xf32, #tpu.memory_space<vmem>>, %arg4: memref<8x128xf32, #tpu.memory_space<vmem>>) attributes {dimension_semantics = [#tpu.dimension_semantics<parallel>], iteration_bounds = array<i64: 1>, scalar_prefetch = 0 : i64, scratch_operands = 0 : i64, tpu.core_type = #tpu.core_type<tc>, window_params = [{transform_indices = @transform_0, window_bounds = array<i64: 8, 128>}, {pipeline_mode = #tpu.pipeline_mode<synchronous>, transform_indices = @transform_1, window_bounds = array<i64: 128, 128>}, {pipeline_mode = #tpu.pipeline_mode<synchronous>, transform_indices = @transform_2, window_bounds = array<i64: 1, 128>}, {transform_indices = @transform_3, window_bounds = array<i64: 8, 128>}]} {
    %c0 = arith.constant 0 : index
    %c0_0 = arith.constant 0 : index
    %0 = vector.load %arg1[%c0, %c0_0] : memref<8x128xf32, #tpu.memory_space<vmem>>, vector<8x128xf32>
    %c0_1 = arith.constant 0 : index
    %c0_2 = arith.constant 0 : index
    %1 = vector.load %arg2[%c0_1, %c0_2] : memref<128x128xf32, #tpu.memory_space<vmem>>, vector<128x128xf32>
    %cst = arith.constant dense<0.000000e+00> : vector<8x128xf32>
    %2 = tpu.matmul %0, %1, %cst {dimension_numbers = #tpu.dot_dimension_numbers<[1], [0], [0], [1], [0, 0, 1, 1], [], []>} : vector<8x128xf32>, vector<128x128xf32>, vector<8x128xf32> -> vector<8x128xf32>
    %c0_3 = arith.constant 0 : index
    %c0_4 = arith.constant 0 : index
    %3 = vector.load %arg3[%c0_3, %c0_4] : memref<1x128xf32, #tpu.memory_space<vmem>>, vector<1x128xf32>
    %4 = vector.broadcast %3 : vector<1x128xf32> to vector<8x128xf32>
    %5 = arith.addf %2, %4 : vector<8x128xf32>
    %c0_5 = arith.constant 0 : index
    %c0_6 = arith.constant 0 : index
    %6 = vector.load %arg4[%c0_5, %c0_6] : memref<8x128xf32, #tpu.memory_space<vmem>>, vector<8x128xf32>
    tpu.vector_store %arg4[%c0_5, %c0_6], %5 {strides = array<i32>} : memref<8x128xf32, #tpu.memory_space<vmem>>, vector<8x128xf32>,
    return
  }
  func.func @transform_0(%arg0: i32) -> (i32, i32) {
    %c0_i32 = arith.constant 0 : i32
    %c0_i32_0 = arith.constant 0 : i32
    return %arg0, %c0_i32 : i32, i32
  }
  func.func @transform_1(%arg0: i32) -> (i32, i32) {
    %c0_i32 = arith.constant 0 : i32
    %c0_i32_0 = arith.constant 0 : i32
    %c0_i32_1 = arith.constant 0 : i32
    return %c0_i32, %c0_i32_0 : i32, i32
  }
  func.func @transform_2(%arg0: i32) -> (i32, i32) {
    %c0_i32 = arith.constant 0 : i32
    %c0_i32_0 = arith.constant 0 : i32
    %c0_i32_1 = arith.constant 0 : i32
    return %c0_i32, %c0_i32_0 : i32, i32
  }
  func.func @transform_3(%arg0: i32) -> (i32, i32) {
    %c0_i32 = arith.constant 0 : i32
    %c0_i32_0 = arith.constant 0 : i32
    return %arg0, %c0_i32 : i32, i32
  }
}

module attributes {stable_mosaic.version = 11 : i64} {
  func.func @kernel(%arg0: i32, %arg1: memref<8x128xf32, #tpu.memory_space<vmem>>, %arg2: memref<128x128xf32, #tpu.memory_space<vmem>>, %arg3: memref<1x128xf32, #tpu.memory_space<vmem>>, %arg4: memref<8x128xf32, #tpu.memory_space<vmem>>) attributes {dimension_semantics = [#tpu.dimension_semantics<parallel>], iteration_bounds = array<i64: 1>, scalar_prefetch = 0 : i64, scratch_operands = 0 : i64, tpu.core_type = #tpu.core_type<tc>, window_params = [{transform_indices = @transform_0, window_bounds = array<i64: 8, 128>}, {pipeline_mode = #tpu.pipeline_mode<synchronous>, transform_indices = @transform_1, window_bounds = array<i64: 128, 128>}, {pipeline_mode = #tpu.pipeline_mode<synchronous>, transform_indices = @transform_2, window_bounds = array<i64: 1, 128>}, {transform_indices = @transform_3, window_bounds = array<i64: 8, 128>}]} {
    %c0 = arith.constant 0 : index
    %c0_0 = arith.constant 0 : index
    %0 = vector.load %arg1[%c0, %c0_0] : memref<8x128xf32, #tpu.memory_space<vmem>>, vector<8x128xf32>
    %c0_1 = arith.constant 0 : index
    %c0_2 = arith.constant 0 : index
    %1 = vector.load %arg2[%c0_1, %c0_2] : memref<128x128xf32, #tpu.memory_space<vmem>>, vector<128x128xf32>
    %cst = arith.constant dense<0.000000e+00> : vector<8x128xf32>
    %2 = tpu.matmul %0, %1, %cst {dimension_numbers = #tpu.dot_dimension_numbers<[1], [0], [0], [1], [0, 0, 1, 1], [], []>} : vector<8x128xf32>, vector<128x128xf32>, vector<8x128xf32> -> vector<8x128xf32>
    %c0_3 = arith.constant 0 : index
    %c0_4 = arith.constant 0 : index
    %3 = vector.load %arg3[%c0_3, %c0_4] : memref<1x128xf32, #tpu.memory_space<vmem>>, vector<1x128xf32>
    %4 = vector.broadcast %3 : vector<1x128xf32> to vector<8x128xf32>
    %5 = arith.addf %2, %4 : vector<8x128xf32>
    %c0_5 = arith.constant 0 : index
    %c0_6 = arith.constant 0 : index
    %6 = vector.load %arg4[%c0_5, %c0_6] : memref<8x128xf32, #tpu.memory_space<vmem>>, vector<8x128xf32>
    tpu.vector_store %arg4[%c0_5, %c0_6], %5 {strides = array<i32>} : memref<8x128xf32, #tpu.memory_space<vmem>>, vector<8x128xf32>,
    return
  }
  func.func @transform_0(%arg0: i32) -> (i32, i32) {
    %c0_i32 = arith.constant 0 : i32
    %c0_i32_0 = arith.constant 0 : i32
    return %arg0, %c0_i32 : i32, i32
  }
  func.func @transform_1(%arg0: i32) -> (i32, i32) {
    %c0_i32 = arith.constant 0 : i32
    %c0_i32_0 = arith.constant 0 : i32
    %c0_i32_1 = arith.constant 0 : i32
    return %c0_i32, %c0_i32_0 : i32, i32
  }
  func.func @transform_2(%arg0: i32) -> (i32, i32) {
    %c0_i32 = arith.constant 0 : i32
    %c0_i32_0 = arith.constant 0 : i32
    %c0_i32_1 = arith.constant 0 : i32
    return %c0_i32, %c0_i32_0 : i32, i32
  }
  func.func @transform_3(%arg0: i32) -> (i32, i32) {
    %c0_i32 = arith.constant 0 : i32
    %c0_i32_0 = arith.constant 0 : i32
    return %arg0, %c0_i32 : i32, i32
  }
}

</mosaic_0001>

<bundles_post_ra>
// kernel: tpu_custom_call.1
= control target key start
LH: loop header
LB: loop body
LE: loop exit
PB: predicated region body
PF: predicated region fallthrough
CT: control target
= control target key end

     0   :  { %8 = vsyncpa [#allocation3], 0  ;;  %s226_s0 = inlined_call_operand.hbm [shape: f32[8,128], index: 0, kind: input, shape index: {}]   ;;  %s227_s1 = inlined_call_operand.hbm [shape: f32[128,128], index: 1, kind: input, shape index: {}]   ;;  %s228_s2 = inlined_call_operand.vmem [shape: f32[1,128], index: 2, kind: input, shape index: {}]   ;;  %s229_s3 = inlined_call_operand.hbm [shape: f32[8,128], index: 3, kind: output, shape index: {}]  }
   0x1   :  { %9 = vsyncpa [#allocation6], 0 }
   0x2   :  { %10 = vsyncpa [#allocation4], 0  ;;  %s16_s14 = sshll.u32 %s226_s0, 4  ;;  %s189_s15 = smov [#allocation2]   ;;  %s17_s14 = int_to_ptr.hbm [resolvable:$true] %s16_s14 }
   0x3   :  { %s18_s16 = sshll.u32 %s189_s15, 4  ;;  %s26_s19 = sshll.u32 %s227_s1, 4  ;;  %s19_s16 = int_to_ptr.vmem [resolvable:$true] %s18_s16  ;;  %s27_s19 = int_to_ptr.hbm [resolvable:$true] %s26_s19 }
   0x4   :  { %21 = dma.hbm_to_vmem [thread:$0]  %s17_s14, 128, %s19_s16, [#allocation3]  }
   0x5   :  { %s190_s20 = smov [#allocation5]   ;;  %s191_s22 = smov 128  }
   0x6   :  { %s28_s21 = sshll.u32 %s190_s20, 4  ;;  %s192_s23 = smov 8   ;;  %s29_s21 = int_to_ptr.vmem [resolvable:$true] %s28_s21 }
   0x7   :  { %34 = dma.hbm_to_vmem [thread:$0]  %s27_s19, 2048, %s29_s21, [#allocation6], %s191_s22, %s191_s22, %s192_s23  }
   0x8   :  { %183 = dma.done.wait [#allocation3], 128  }
   0x9   :  { %184 = vsyncadd [#allocation3], 4294967168 }
   0xa   :  { %185 = dma.done.wait [#allocation6], 2048  }
   0xb   :  { %186 = vsyncadd [#allocation6], 4294965248  ;;  %v61_v0 = vld [vmem:[#allocation5 + $0x78] sm:$0xff]  ;;  %v60_v1 = vld [vmem:[#allocation5 + $0x70] sm:$0xff]  ;;  %s193_s24 = smov [#allocation7]   ;;  %s94_s28 = sshll.u32 %s229_s3, 4  ;;  %s95_s28 = int_to_ptr.hbm [resolvable:$true] %s94_s28 }
   0xc   :  { %66 = vmatpush.msra.mxu0 %v61_v0  ;;  %v59_v2 = vld [vmem:[#allocation5 + $0x68] sm:$0xff]  ;;  %v58_v3 = vld [vmem:[#allocation5 + $0x60] sm:$0xff]  ;;  %v57_v4 = vld [vmem:[#allocation5 + $0x58] sm:$0xff]  ;;  %s92_s25 = sshll.u32 %s193_s24, 4  ;;  %s93_s25 = int_to_ptr.vmem [resolvable:$true] %s92_s25 }
   0xd   :  { %v56_v5 = vld [vmem:[#allocation5 + $0x50] sm:$0xff]  ;;  %v55_v6 = vld [vmem:[#allocation5 + $0x48] sm:$0xff]  ;;  %v54_v7 = vld [vmem:[#allocation5 + $0x40] sm:$0xff] }
   0xe   :  { %67 = vmatpush.msra.mxu0 %v60_v1  ;;  %v53_v8 = vld [vmem:[#allocation5 + $0x38] sm:$0xff]  ;;  %v52_v9 = vld [vmem:[#allocation5 + $0x30] sm:$0xff]  ;;  %v51_v10 = vld [vmem:[#allocation5 + $0x28] sm:$0xff] }
   0xf   :  { %v50_v11 = vld [vmem:[#allocation5 + $0x20] sm:$0xff]  ;;  %v49_v12 = vld [vmem:[#allocation5 + $0x18] sm:$0xff]  ;;  %v48_v13 = vld [vmem:[#allocation5 + $0x10] sm:$0xff] }
  0x10   :  { %68 = vmatpush.msra.mxu0 %v59_v2  ;;  %v47_v14 = vld [vmem:[#allocation5 + $0x8] sm:$0xff]  ;;  %v46_v15 = vld [vmem:[#allocation5] sm:$0xff]  ;;  %v45_v16 = vld [vmem:[#allocation2] sm:$0xff] }
  0x11   :  { %v110_v17 = vld [vmem:[%s228_s2] ss:$0 sm:$0xff] }
  0x12   :  { %69 = vmatpush.msra.mxu0 %v58_v3 }
  0x14   :  { %70 = vmatpush.msra.mxu0 %v57_v4 }
  0x16   :  { %71 = vmatpush.msra.mxu0 %v56_v5 }
  0x18   :  { %72 = vmatpush.msra.mxu0 %v55_v6 }
  0x1a   :  { %73 = vmatpush.msra.mxu0 %v54_v7 }
  0x1c   :  { %74 = vmatpush.msra.mxu0 %v53_v8 }
  0x1e   :  { %75 = vmatpush.msra.mxu0 %v52_v9 }
  0x20   :  { %76 = vmatpush.msra.mxu0 %v51_v10 }
  0x22   :  { %77 = vmatpush.msra.mxu0 %v50_v11 }
  0x24   :  { %78 = vmatpush.msra.mxu0 %v49_v12 }
  0x26   :  { %79 = vmatpush.msra.mxu0 %v48_v13 }
  0x28   :  { %80 = vmatpush.msra.mxu0 %v47_v14 }
  0x2a   :  { %81 = vmatpush.msra.mxu0 %v46_v15 }
  0x2b   :  { %82 = vmatmul.f32.vlgmr.msra.gmra.mxu0 %v45_v16 }
  0xa8   :  { %v83_v18 = vpop.f32.mrf.mxu0 }
  0xa9   :  { %v84_v19 = vadd.f32 %v110_v17, %v83_v18 }
  0xab   :  { %86 = vst [vmem:[#allocation7] sm:$0xff] %v84_v19 }
  0xac   :  { %97 = dma.vmem_to_hbm [thread:$0]  %s93_s25, 128, %s95_s28, [#allocation4]  }
  0xad   :  { %187 = dma.done.wait [#allocation4], 128  }
  0xae   :  { %188 = vsyncadd [#allocation4], 4294967168 }
  0xaf   :  { %102 = vsyncpa [#allocation3], 1 }
  0xb0   :  { %103 = vsyncpa [#allocation6], 1 }
  0xb1   :  { %104 = vsyncpa [#allocation4], 1 }

// kernel: tpu_custom_call.1
= control target key start
LH: loop header
LB: loop body
LE: loop exit
PB: predicated region body
PF: predicated region fallthrough
CT: control target
= control target key end

     0   :  { %8 = vsyncpa [#allocation3], 0  ;;  %s226_s0 = inlined_call_operand.hbm [shape: f32[8,128], index: 0, kind: input, shape index: {}]   ;;  %s227_s1 = inlined_call_operand.hbm [shape: f32[128,128], index: 1, kind: input, shape index: {}]   ;;  %s228_s2 = inlined_call_operand.vmem [shape: f32[1,128], index: 2, kind: input, shape index: {}]   ;;  %s229_s3 = inlined_call_operand.hbm [shape: f32[8,128], index: 3, kind: output, shape index: {}]  }
   0x1   :  { %9 = vsyncpa [#allocation6], 0 }
   0x2   :  { %10 = vsyncpa [#allocation4], 0  ;;  %s16_s14 = sshll.u32 %s226_s0, 4  ;;  %s189_s15 = smov [#allocation2]   ;;  %s17_s14 = int_to_ptr.hbm [resolvable:$true] %s16_s14 }
   0x3   :  { %s18_s16 = sshll.u32 %s189_s15, 4  ;;  %s26_s19 = sshll.u32 %s227_s1, 4  ;;  %s19_s16 = int_to_ptr.vmem [resolvable:$true] %s18_s16  ;;  %s27_s19 = int_to_ptr.hbm [resolvable:$true] %s26_s19 }
   0x4   :  { %21 = dma.hbm_to_vmem [thread:$0]  %s17_s14, 128, %s19_s16, [#allocation3]  }
   0x5   :  { %s190_s20 = smov [#allocation5]   ;;  %s191_s22 = smov 128  }
   0x6   :  { %s28_s21 = sshll.u32 %s190_s20, 4  ;;  %s192_s23 = smov 8   ;;  %s29_s21 = int_to_ptr.vmem [resolvable:$true] %s28_s21 }
   0x7   :  { %34 = dma.hbm_to_vmem [thread:$0]  %s27_s19, 2048, %s29_s21, [#allocation6], %s191_s22, %s191_s22, %s192_s23  }
   0x8   :  { %183 = dma.done.wait [#allocation3], 128  }
   0x9   :  { %184 = vsyncadd [#allocation3], 4294967168 }
   0xa   :  { %185 = dma.done.wait [#allocation6], 2048  }
   0xb   :  { %186 = vsyncadd [#allocation6], 4294965248  ;;  %v61_v0 = vld [vmem:[#allocation5 + $0x78] sm:$0xff]  ;;  %v60_v1 = vld [vmem:[#allocation5 + $0x70] sm:$0xff]  ;;  %s193_s24 = smov [#allocation7]   ;;  %s94_s28 = sshll.u32 %s229_s3, 4  ;;  %s95_s28 = int_to_ptr.hbm [resolvable:$true] %s94_s28 }
   0xc   :  { %66 = vmatpush.msra.mxu0 %v61_v0  ;;  %v59_v2 = vld [vmem:[#allocation5 + $0x68] sm:$0xff]  ;;  %v58_v3 = vld [vmem:[#allocation5 + $0x60] sm:$0xff]  ;;  %v57_v4 = vld [vmem:[#allocation5 + $0x58] sm:$0xff]  ;;  %s92_s25 = sshll.u32 %s193_s24, 4  ;;  %s93_s25 = int_to_ptr.vmem [resolvable:$true] %s92_s25 }
   0xd   :  { %v56_v5 = vld [vmem:[#allocation5 + $0x50] sm:$0xff]  ;;  %v55_v6 = vld [vmem:[#allocation5 + $0x48] sm:$0xff]  ;;  %v54_v7 = vld [vmem:[#allocation5 + $0x40] sm:$0xff] }
   0xe   :  { %67 = vmatpush.msra.mxu0 %v60_v1  ;;  %v53_v8 = vld [vmem:[#allocation5 + $0x38] sm:$0xff]  ;;  %v52_v9 = vld [vmem:[#allocation5 + $0x30] sm:$0xff]  ;;  %v51_v10 = vld [vmem:[#allocation5 + $0x28] sm:$0xff] }
   0xf   :  { %v50_v11 = vld [vmem:[#allocation5 + $0x20] sm:$0xff]  ;;  %v49_v12 = vld [vmem:[#allocation5 + $0x18] sm:$0xff]  ;;  %v48_v13 = vld [vmem:[#allocation5 + $0x10] sm:$0xff] }
  0x10   :  { %68 = vmatpush.msra.mxu0 %v59_v2  ;;  %v47_v14 = vld [vmem:[#allocation5 + $0x8] sm:$0xff]  ;;  %v46_v15 = vld [vmem:[#allocation5] sm:$0xff]  ;;  %v45_v16 = vld [vmem:[#allocation2] sm:$0xff] }
  0x11   :  { %v110_v17 = vld [vmem:[%s228_s2] ss:$0 sm:$0xff] }
  0x12   :  { %69 = vmatpush.msra.mxu0 %v58_v3 }
  0x14   :  { %70 = vmatpush.msra.mxu0 %v57_v4 }
  0x16   :  { %71 = vmatpush.msra.mxu0 %v56_v5 }
  0x18   :  { %72 = vmatpush.msra.mxu0 %v55_v6 }
  0x1a   :  { %73 = vmatpush.msra.mxu0 %v54_v7 }
  0x1c   :  { %74 = vmatpush.msra.mxu0 %v53_v8 }
  0x1e   :  { %75 = vmatpush.msra.mxu0 %v52_v9 }
  0x20   :  { %76 = vmatpush.msra.mxu0 %v51_v10 }
  0x22   :  { %77 = vmatpush.msra.mxu0 %v50_v11 }
  0x24   :  { %78 = vmatpush.msra.mxu0 %v49_v12 }
  0x26   :  { %79 = vmatpush.msra.mxu0 %v48_v13 }
  0x28   :  { %80 = vmatpush.msra.mxu0 %v47_v14 }
  0x2a   :  { %81 = vmatpush.msra.mxu0 %v46_v15 }
  0x2b   :  { %82 = vmatmul.f32.vlgmr.msra.gmra.mxu0 %v45_v16 }
  0xa8   :  { %v83_v18 = vpop.f32.mrf.mxu0 }
  0xa9   :  { %v84_v19 = vadd.f32 %v110_v17, %v83_v18 }
  0xab   :  { %86 = vst [vmem:[#allocation7] sm:$0xff] %v84_v19 }
  0xac   :  { %97 = dma.vmem_to_hbm [thread:$0]  %s93_s25, 128, %s95_s28, [#allocation4]  }
  0xad   :  { %187 = dma.done.wait [#allocation4], 128  }
  0xae   :  { %188 = vsyncadd [#allocation4], 4294967168 }
  0xaf   :  { %102 = vsyncpa [#allocation3], 1 }
  0xb0   :  { %103 = vsyncpa [#allocation6], 1 }
  0xb1   :  { %104 = vsyncpa [#allocation4], 1 }

</bundles_post_ra>
